<compile_context>
chip_gen: v5e
topology: v5e:2x2
jax: 0.10.0
libtpu: 0.0.40
codegen_flags: <defaults>
</compile_context>

<pallas_src>
import math
import numpy as np

import jax
import jax.numpy as jnp
from jax import lax
from jax.experimental import pallas as pl
from jax.experimental.pallas import tpu as pltpu


def _round_up(x, m):
    return ((x + m - 1) // m) * m


def _emb_pos_ln_kernel(tn, emb_size, vocab_size, eps):
    inv_e = 1.0 / float(emb_size)

    def kernel(ids_ref, w_ref, div_ref, phase_ref, gamma_ref, beta_ref, out_ref):
        # ids_ref   : (1, TN, 1) int32   token ids for this sequence tile
        # w_ref     : (V, E)     f32     full embedding table (VMEM-resident)
        # div_ref   : (1, E)     f32     [d0, d0, d1, d1, ...]
        # phase_ref : (1, E)     f32     [0, pi/2, 0, pi/2, ...]
        # gamma_ref : (1, E)     f32
        # beta_ref  : (1, E)     f32
        # out_ref   : (1, TN, E) f32
        ids = ids_ref[0]                                           # (TN, 1)

        # ---- embedding gather as a one-hot MXU matmul (exact in f32) ----
        # TODO(synk): for vocabularies whose table exceeds VMEM, replace with a
        # scalar-prefetch / DMA row gather; this path is exact & fast for
        # VMEM-resident tables.
        vocab_iota = lax.broadcasted_iota(jnp.int32, (tn, vocab_size), 1)
        onehot = (vocab_iota == ids).astype(jnp.float32)           # (TN, V)
        words = jnp.dot(onehot, w_ref[...],
                        preferred_element_type=jnp.float32,
                        precision=lax.Precision.HIGHEST)           # (TN, E)

        # ---- sinusoidal positional encoding: single sin, phase-shifted for cos ----
        row = lax.broadcasted_iota(jnp.int32, (tn, emb_size), 0)
        pos = (row + pl.program_id(1) * tn).astype(jnp.float32)    # (TN, E)
        pe = jnp.sin(pos * div_ref[...] + phase_ref[...])          # (TN, E)

        x = words + pe

        # ---- LayerNorm over the embedding axis ----
        u = jnp.sum(x, axis=-1, keepdims=True) * inv_e
        xc = x - u
        var = jnp.sum(xc * xc, axis=-1, keepdims=True) * inv_e
        y = xc * lax.rsqrt(var + eps)
        out_ref[0] = (y * gamma_ref[...] + beta_ref[...]).astype(out_ref.dtype)

    return kernel


def embeddings_add_position(input_ids, emb_weight, gamma, beta, *, eps=1e-12, tn=None):
    """Pallas equivalent of Embeddings_add_position(vocab, E).forward(input_ids) in eval mode."""
    B, S = input_ids.shape
    V, E = emb_weight.shape
    assert E % 2 == 0, "emb_size must be even"

    # --- pick sequence tile so (resident table + working tiles) stays in VMEM ---
    table_bytes = 4 * V * E

    def working_bytes(t):
        # ids + out double-buffered, plus per-step onehot / f32 intermediates.
        return 4 * t * (2 * 1 + 2 * E + V + 4 * E)

    if tn is None:
        tn = 512
        while tn > 8 and table_bytes + working_bytes(tn) > 48 * 1024 * 1024:
            tn //= 2
    tn = max(8, _round_up(min(tn, _round_up(S, 8)), 8))
    S_pad = _round_up(S, tn)
    n_t = S_pad // tn

    ids = input_ids.astype(jnp.int32)
    if S_pad != S:
        ids = jnp.pad(ids, ((0, 0), (0, S_pad - S)))
    ids3 = ids[..., None]                                          # (B, S_pad, 1)

    # div computed in float64 like torch's .double(), used as f32 on TPU.
    half = np.exp(np.arange(0.0, E, 2, dtype=np.float64) * -(math.log(10000.0) / E))
    div2 = jnp.asarray(np.repeat(half, 2).astype(np.float32)[None, :])             # (1, E)
    phase = jnp.asarray(
        np.tile(np.array([0.0, np.pi / 2.0], np.float64), E // 2).astype(np.float32)[None, :])

    w = emb_weight.astype(jnp.float32)
    gamma2 = jnp.asarray(gamma, jnp.float32).reshape(1, E)
    beta2 = jnp.asarray(beta, jnp.float32).reshape(1, E)

    kernel = _emb_pos_ln_kernel(tn, E, V, float(eps))

    cost = pl.CostEstimate(
        flops=int(2 * B * S_pad * V * E + 8 * B * S_pad * E),
        transcendentals=int(B * S_pad * E),
        bytes_accessed=int(4 * (B * S_pad + V * E + B * S_pad * E)),
    )

    # VMEM budget: never below the 32 MiB default region, never above 64 MiB
    # (v7x physical per-TC VMEM).
    need = table_bytes + working_bytes(tn) + (1 << 20)
    vmem_limit = int(min(64 * 1024 * 1024, max(32 * 1024 * 1024, need)))

    out = pl.pallas_call(
        kernel,
        out_shape=jax.ShapeDtypeStruct((B, S_pad, E), jnp.float32),
        grid=(B, n_t),
        in_specs=[
            pl.BlockSpec((1, tn, 1), lambda b, t: (b, t, 0)),   # token ids
            pl.BlockSpec((V, E), lambda b, t: (0, 0)),          # embedding table (resident)
            pl.BlockSpec((1, E), lambda b, t: (0, 0)),          # div2
            pl.BlockSpec((1, E), lambda b, t: (0, 0)),          # phase
            pl.BlockSpec((1, E), lambda b, t: (0, 0)),          # gamma
            pl.BlockSpec((1, E), lambda b, t: (0, 0)),          # beta
        ],
        out_specs=pl.BlockSpec((1, tn, E), lambda b, t: (b, t, 0)),
        compiler_params=pltpu.CompilerParams(
            dimension_semantics=("parallel", "parallel"),
            vmem_limit_bytes=vmem_limit),
        cost_estimate=cost,
    )(ids3, w, div2, phase, gamma2, beta2)

    # TODO(synk): nn.Dropout(0.1) is training-only; this forward matches eval() (identity).
    return out[:, :S, :]


def embeddings_add_position_ref(input_ids, emb_weight, gamma, beta, eps=1e-12):
    """Pure-JAX reference mirroring the PyTorch module (eval mode)."""
    B, S = input_ids.shape
    V, E = emb_weight.shape
    pos = jnp.arange(S, dtype=jnp.float32)[None, :, None]                 # (1, S, 1)
    half = jnp.asarray(np.exp(np.arange(0.0, E, 2, dtype=np.float64)
                              * -(math.log(10000.0) / E)).astype(np.float32))
    ang = pos * half                                                      # (1, S, E//2)
    pe = jnp.zeros((B, S, E), jnp.float32)
    pe = pe.at[..., 0::2].set(jnp.broadcast_to(jnp.sin(ang), (B, S, E // 2)))
    pe = pe.at[..., 1::2].set(jnp.broadcast_to(jnp.cos(ang), (B, S, E // 2)))
    x = emb_weight[input_ids] + pe
    u = x.mean(-1, keepdims=True)
    s = ((x - u) ** 2).mean(-1, keepdims=True)
    x = (x - u) / jnp.sqrt(s + eps)
    return gamma * x + beta


if __name__ == "__main__":
    B, S, E, V = 2, 16, 32, 30

    key = jax.random.PRNGKey(0)
    k_ids, k_w = jax.random.split(key)
    input_ids = jax.random.randint(k_ids, (B, S), 0, V, dtype=jnp.int32)
    emb_weight = jax.random.normal(k_w, (V, E), dtype=jnp.float32)
    gamma = jnp.ones((E,), jnp.float32)      # LayerNorm defaults
    beta = jnp.zeros((E,), jnp.float32)

    out = embeddings_add_position(input_ids, emb_weight, gamma, beta)
    out = jax.block_until_ready(out)

    ref = embeddings_add_position_ref(input_ids, emb_weight, gamma, beta)
    assert out.shape == (B, S, E), out.shape
    np.testing.assert_allclose(np.asarray(out), np.asarray(ref), rtol=1e-5, atol=1e-5)

    print("KERNEL_OK")
</pallas_src>

<mosaic_0001>
module attributes {stable_mosaic.version = 11 : i64} {
  func.func @kernel(%arg0: i32, %arg1: i32, %arg2: memref<1x16x1xi32, #tpu.memory_space<vmem>>, %arg3: memref<30x32xf32, #tpu.memory_space<vmem>>, %arg4: memref<1x32xf32, #tpu.memory_space<vmem>>, %arg5: memref<1x32xf32, #tpu.memory_space<vmem>>, %arg6: memref<1x32xf32, #tpu.memory_space<vmem>>, %arg7: memref<1x32xf32, #tpu.memory_space<vmem>>, %arg8: memref<1x16x32xf32, #tpu.memory_space<vmem>>) attributes {dimension_semantics = [#tpu.dimension_semantics<parallel>, #tpu.dimension_semantics<parallel>], iteration_bounds = array<i64: 2, 1>, scalar_prefetch = 0 : i64, scratch_operands = 0 : i64, tpu.core_type = #tpu.core_type<tc>, window_params = [{transform_indices = @transform_0, window_bounds = array<i64: 1, 16, 1>}, {pipeline_mode = #tpu.pipeline_mode<synchronous>, transform_indices = @transform_1, window_bounds = array<i64: 30, 32>}, {pipeline_mode = #tpu.pipeline_mode<synchronous>, transform_indices = @transform_2, window_bounds = array<i64: 1, 32>}, {pipeline_mode = #tpu.pipeline_mode<synchronous>, transform_indices = @transform_3, window_bounds = array<i64: 1, 32>}, {pipeline_mode = #tpu.pipeline_mode<synchronous>, transform_indices = @transform_4, window_bounds = array<i64: 1, 32>}, {pipeline_mode = #tpu.pipeline_mode<synchronous>, transform_indices = @transform_5, window_bounds = array<i64: 1, 32>}, {transform_indices = @transform_6, window_bounds = array<i64: 1, 16, 32>}]} {
    %c0 = arith.constant 0 : index
    %c0_0 = arith.constant 0 : index
    %c0_1 = arith.constant 0 : index
    %0 = vector.load %arg2[%c0, %c0_0, %c0_1] : memref<1x16x1xi32, #tpu.memory_space<vmem>>, vector<1x16x1xi32>
    %1 = vector.shape_cast %0 : vector<1x16x1xi32> to vector<16x1xi32>
    %2 = tpu.iota {dimensions = array<i32: 1>} : vector<16x30xi32>
    %3 = vector.broadcast %1 : vector<16x1xi32> to vector<16x30xi32>
    %4 = arith.cmpi eq, %2, %3 : vector<16x30xi32>
    %5 = arith.extui %4 : vector<16x30xi1> to vector<16x30xi32>
    %6 = arith.sitofp %5 : vector<16x30xi32> to vector<16x30xf32>
    %c0_2 = arith.constant 0 : index
    %c0_3 = arith.constant 0 : index
    %7 = vector.load %arg3[%c0_2, %c0_3] : memref<30x32xf32, #tpu.memory_space<vmem>>, vector<30x32xf32>
    %cst = arith.constant dense<0.000000e+00> : vector<16x32xf32>
    %8 = tpu.matmul %6, %7, %cst {dimension_numbers = #tpu.dot_dimension_numbers<[1], [0], [0], [1], [0, 0, 1, 1], [], []>, precision = #tpu.contract_precision<fp32>} : vector<16x30xf32>, vector<30x32xf32>, vector<16x32xf32> -> vector<16x32xf32>
    %9 = tpu.iota {dimensions = array<i32: 0>} : vector<16x32xi32>
    %c16_i32 = arith.constant 16 : i32
    %10 = arith.muli %arg1, %c16_i32 : i32
    %11 = vector.broadcast %10 : i32 to vector<16x32xi32>
    %12 = arith.addi %9, %11 : vector<16x32xi32>
    %13 = arith.sitofp %12 : vector<16x32xi32> to vector<16x32xf32>
    %c0_4 = arith.constant 0 : index
    %c0_5 = arith.constant 0 : index
    %14 = vector.load %arg4[%c0_4, %c0_5] : memref<1x32xf32, #tpu.memory_space<vmem>>, vector<1x32xf32>
    %15 = vector.broadcast %14 : vector<1x32xf32> to vector<16x32xf32>
    %16 = arith.mulf %13, %15 : vector<16x32xf32>
    %c0_6 = arith.constant 0 : index
    %c0_7 = arith.constant 0 : index
    %17 = vector.load %arg5[%c0_6, %c0_7] : memref<1x32xf32, #tpu.memory_space<vmem>>, vector<1x32xf32>
    %18 = vector.broadcast %17 : vector<1x32xf32> to vector<16x32xf32>
    %19 = arith.addf %16, %18 : vector<16x32xf32>
    %20 = math.sin %19 : vector<16x32xf32>
    %21 = arith.addf %8, %20 : vector<16x32xf32>
    %cst_8 = arith.constant dense<0.000000e+00> : vector<16xf32>
    %22 = vector.multi_reduction <add>, %21, %cst_8 [1] : vector<16x32xf32> to vector<16xf32>
    %23 = vector.shape_cast %22 : vector<16xf32> to vector<16x1xf32>
    %cst_9 = arith.constant 3.125000e-02 : f32
    %24 = vector.broadcast %cst_9 : f32 to vector<16x1xf32>
    %25 = arith.mulf %23, %24 : vector<16x1xf32>
    %26 = vector.broadcast %25 : vector<16x1xf32> to vector<16x32xf32>
    %27 = arith.subf %21, %26 : vector<16x32xf32>
    %28 = arith.mulf %27, %27 : vector<16x32xf32>
    %cst_10 = arith.constant dense<0.000000e+00> : vector<16xf32>
    %29 = vector.multi_reduction <add>, %28, %cst_10 [1] : vector<16x32xf32> to vector<16xf32>
    %30 = vector.shape_cast %29 : vector<16xf32> to vector<16x1xf32>
    %cst_11 = arith.constant 3.125000e-02 : f32
    %31 = vector.broadcast %cst_11 : f32 to vector<16x1xf32>
    %32 = arith.mulf %30, %31 : vector<16x1xf32>
    %cst_12 = arith.constant 9.99999996E-13 : f32
    %33 = vector.broadcast %cst_12 : f32 to vector<16x1xf32>
    %34 = arith.addf %32, %33 : vector<16x1xf32>
    %35 = math.rsqrt %34 : vector<16x1xf32>
    %36 = vector.broadcast %35 : vector<16x1xf32> to vector<16x32xf32>
    %37 = arith.mulf %27, %36 : vector<16x32xf32>
    %c0_13 = arith.constant 0 : index
    %c0_14 = arith.constant 0 : index
    %38 = vector.load %arg6[%c0_13, %c0_14] : memref<1x32xf32, #tpu.memory_space<vmem>>, vector<1x32xf32>
    %39 = vector.broadcast %38 : vector<1x32xf32> to vector<16x32xf32>
    %40 = arith.mulf %37, %39 : vector<16x32xf32>
    %c0_15 = arith.constant 0 : index
    %c0_16 = arith.constant 0 : index
    %41 = vector.load %arg7[%c0_15, %c0_16] : memref<1x32xf32, #tpu.memory_space<vmem>>, vector<1x32xf32>
    %42 = vector.broadcast %41 : vector<1x32xf32> to vector<16x32xf32>
    %43 = arith.addf %40, %42 : vector<16x32xf32>
    %c0_17 = arith.constant 0 : index
    %c0_18 = arith.constant 0 : index
    %c0_19 = arith.constant 0 : index
    %44 = vector.load %arg8[%c0_17, %c0_18, %c0_19] : memref<1x16x32xf32, #tpu.memory_space<vmem>>, vector<1x16x32xf32>
    %45 = vector.shape_cast %44 : vector<1x16x32xf32> to vector<16x32xf32>
    %46 = vector.shape_cast %43 : vector<16x32xf32> to vector<1x16x32xf32>
    tpu.vector_store %arg8[%c0_17, %c0_18, %c0_19], %46 {strides = array<i32>} : memref<1x16x32xf32, #tpu.memory_space<vmem>>, vector<1x16x32xf32>,
    return
  }
  func.func @transform_0(%arg0: i32, %arg1: i32) -> (i32, i32, i32) {
    %c0_i32 = arith.constant 0 : i32
    %c0_i32_0 = arith.constant 0 : i32
    return %arg0, %arg1, %c0_i32 : i32, i32, i32
  }
  func.func @transform_1(%arg0: i32, %arg1: i32) -> (i32, i32) {
    %c0_i32 = arith.constant 0 : i32
    %c0_i32_0 = arith.constant 0 : i32
    %c0_i32_1 = arith.constant 0 : i32
    return %c0_i32, %c0_i32_0 : i32, i32
  }
  func.func @transform_2(%arg0: i32, %arg1: i32) -> (i32, i32) {
    %c0_i32 = arith.constant 0 : i32
    %c0_i32_0 = arith.constant 0 : i32
    %c0_i32_1 = arith.constant 0 : i32
    return %c0_i32, %c0_i32_0 : i32, i32
  }
  func.func @transform_3(%arg0: i32, %arg1: i32) -> (i32, i32) {
    %c0_i32 = arith.constant 0 : i32
    %c0_i32_0 = arith.constant 0 : i32
    %c0_i32_1 = arith.constant 0 : i32
    return %c0_i32, %c0_i32_0 : i32, i32
  }
  func.func @transform_4(%arg0: i32, %arg1: i32) -> (i32, i32) {
    %c0_i32 = arith.constant 0 : i32
    %c0_i32_0 = arith.constant 0 : i32
    %c0_i32_1 = arith.constant 0 : i32
    return %c0_i32, %c0_i32_0 : i32, i32
  }
  func.func @transform_5(%arg0: i32, %arg1: i32) -> (i32, i32) {
    %c0_i32 = arith.constant 0 : i32
    %c0_i32_0 = arith.constant 0 : i32
    %c0_i32_1 = arith.constant 0 : i32
    return %c0_i32, %c0_i32_0 : i32, i32
  }
  func.func @transform_6(%arg0: i32, %arg1: i32) -> (i32, i32, i32) {
    %c0_i32 = arith.constant 0 : i32
    %c0_i32_0 = arith.constant 0 : i32
    return %arg0, %arg1, %c0_i32 : i32, i32, i32
  }
}

</mosaic_0001>

<bundles_post_ra>
// kernel: tpu_custom_call.1
= control target key start
LH: loop header
LB: loop body
LE: loop exit
PB: predicated region body
PF: predicated region fallthrough
CT: control target
= control target key end

     0   :  { %11 = vsyncpa [#allocation3], 0  ;;  %s1587_s0 = inlined_call_operand.vmem [shape: s32[2,16,1], index: 0, kind: input, shape index: {}]   ;;  %s1588_s1 = inlined_call_operand.vmem [shape: f32[30,32], index: 1, kind: input, shape index: {}]   ;;  %s1589_s2 = inlined_call_operand.vmem [shape: f32[1,32], index: 2, kind: input, shape index: {}]   ;;  %s1590_s3 = inlined_call_operand.vmem [shape: f32[1,32], index: 3, kind: input, shape index: {}]   ;;  %s1591_s4 = inlined_call_operand.vmem [shape: f32[1,32], index: 4, kind: input, shape index: {}]   ;;  %s1592_s5 = inlined_call_operand.vmem [shape: f32[1,32], index: 5, kind: input, shape index: {}]   ;;  %s1593_s6 = inlined_call_operand.hbm [shape: f32[2,16,32], index: 6, kind: output, shape index: {}]  }
   0x1   :  { %13 = vsyncpa [#allocation3 + $0x1], 0  ;;  %s1251_s21 = smov 0   ;;  %s1253_s22 = smov 0  }
   0x2   :  { %s1255_s23 = smov 0   ;;  %s1257_s24 = smov 0  }
   0x3   :  { %s1259_s25 = smov 0   ;;  %s1261_s26 = smov 0  }
   0x4 LB: > { %s1015_s27 = sadd.s32 4294967295, %s1204_s26   ;;  %s1016_s28 = sadd.s32 4294967294, %s1204_s26   ;;  %s1204_s26 = sphi %s1261_s26, %s19_s26   ;;  %s1200_s25 = sphi %s1259_s25, %s1604_s25   ;;  %s1196_s24 = sphi %s1257_s24, %s1603_s24   ;;  %s1192_s23 = sphi %s1255_s23, %s1602_s23   ;;  %s1188_s22 = sphi %s1253_s22, %s1601_s22   ;;  %s1184_s21 = sphi %s1251_s21, %s1600_s21  }
   0x5   : > { %s31_s29 = sadd.s32 1, %s1200_s25  ;;  %s173_s30 = sadd.s32 1, %s1192_s23 }
   0x6   : > { %p33_p0 = scmp.ge.s32.totalorder %s31_s29, 2  ;;  %p183_p1 = scmp.ne.s32.totalorder %s1192_s23, %s1188_s22 }
   0x7   : > { %p184_p2 = scmp.eq.s32.totalorder %s1015_s27, 1  ;;  %p189_p3 = scmp.ne.s32.totalorder %s1188_s22, %s1184_s21 }
   0x8   : > { %s1606_s29 = smov (%p33_p0, %s31_s29), 0  ;;  %p190_p5 = scmp.eq.s32.totalorder %s1016_s28, 1 }
   0x9   : > { %p1291_p4 = por %p184_p2, %p183_p1  ;;  %s168_s8 = ssub.s32 %s1200_s25, %s1606_s29 }
   0xa   : > { %p1019_p6 = scmp.ge.s32.totalorder %s1204_s26, 1  ;;  %p171_p7 = scmp.eq.s32.totalorder %s168_s8, 0 }
   0xb   : > { %p1298_p8 = por %p190_p5, %p189_p3  ;;  %p236_p9 = scmp.lt.s32.totalorder %s1204_s26, 3 }
   0xc   : > { %s1304_s10 = scalar_select %p171_p7, %s1192_s23, %s173_s30  }
   0xd   : > { %p237_p10 = pnand %p1019_p6, %p236_p9 }
   0xe   : > { %p271_p11 = scmp.lt.s32.totalorder (!%p237_p10), %s1196_s24, 1  ;;  %s267_s14 = sand.u32 (!%p237_p10), 1, %s1188_s22  }
   0xf   : > { %240 = sbr.rel (%p237_p10) target bundleno = 581 (0x245), region = 44  ;;  %s1020_s19 = sshll.u32 (!%p237_p10), %s267_s14, 4 }
  0x10   : > { %s1043_s20 = sshll.u32 (!%p237_p10), %s1196_s24, 4  ;;  %s269_s8 = scalar_lea.vmem (!%p237_p10), [#allocation2], %s1020_s19 }
  0x11   : > { %s932_s30 = scalar_lea.hbm (!%p237_p10), %s1593_s6, %s1043_s20  ;;  %s933_s11 = sshll.u32 (!%p237_p10), %s269_s8, 4  ;;  %s934_s11 = int_to_ptr.vmem [resolvable:$true] %s933_s11 }
  0x12   : > { %s935_s12 = sshll.u32 (!%p237_p10), %s932_s30, 4  ;;  %s936_s12 = int_to_ptr.hbm [resolvable:$true] %s935_s12 }
  0x13   : > { %s1140_s13 = sshra.s32 (!%p237_p10), %s936_s12, 4  ;;  %s1141_s13 = int_to_ptr.hbm [resolvable:$true] %s1140_s13 }
  0x14   : > { %v300_v0 = vld [vmem:[%s1588_s1 + $0x18] sm:$0x3f]  ;;  %vm639_vm0 = vcmask 1045504   ;;  %v299_v1 = vld [vmem:[%s1588_s1 + $0x10] sm:$0xff]  ;;  %v1206_v2 = vmov 0   ;;  %v298_v5 = vld [vmem:[%s1588_s1 + $0x8] sm:$0xff]  ;;  %v283_v28 = vlaneseq  ;;  %p1147_p1 = scmp.lt.s32.totalorder %s1141_s13, %s1593_s6 }
  0x15   : > { %1117 = vset.pattern.permute.xlu0 %v1206_v2  ;;  %v641_v3 = vsel %vm639_vm0, %v300_v0, 0  ;;  %v657_v4 = vand.u32 4294901760, %v299_v1  ;;  %s272_s17 = scalar_select %p271_p11, %s1196_s24, 1  ;;  %v659_v7 = vand.u32 4294901760, %v298_v5  ;;  %v297_v22 = vld [vmem:[%s1588_s1] sm:$0xff]  ;;  %vm632_vm1 = vcmask 244736  }
  0x16   : > { %v655_v6 = vand.u32 4294901760, %v641_v3  ;;  %v661_v23 = vand.u32 4294901760, %v297_v22  ;;  %v302_v29 = vshrl.u32 %v283_v28, 7  ;;  %v1118_v32 = vld [vmem:[%s1589_s2] ss:$0 sm:$0xff]  ;;  %v284_v36 = vand.u32 127, %v283_v28 }
  0x17   : > { %v699_v8 = vsub.f32 %v299_v1, %v657_v4  ;;  %s1042_s18 = sshll.u32 %s272_s17, 4  ;;  %v705_v10 = vsub.f32 %v298_v5, %v659_v7  ;;  %v1119_v35 = vld [vmem:[%s1590_s3] ss:$0 sm:$0xff]  ;;  %v1207_v42 = vmov 0.0   ;;  %s919_s24 = scalar_lea.sflag [#allocation3], %s267_s14 }
  0x18   : > { %v693_v9 = vsub.f32 %v641_v3, %v655_v6  ;;  %1044 = vmatpush.msra.mxu2 %v655_v6  ;;  %656 = vmatpush.msra.mxu0 %v655_v6  ;;  %s278_s27 = scalar_lea.vmem %s1587_s0, %s1042_s18  ;;  %v711_v24 = vsub.f32 %v297_v22, %v661_v23  ;;  %v303_v30 = vadd.s32 8, %v302_v29  ;;  %v308_v33 = vcvt.s32.f32 %v302_v29  ;;  %s1142_s15 = scalar_lea.hbm %s1141_s13, 16 }
  0x19   : > { %v700_v11 = vand.u32 4294901760, %v699_v8  ;;  %v282_v12 = vld [vmem:[%s278_s27 + $0x8] sm:$0xff]  ;;  %v706_v14 = vand.u32 4294901760, %v705_v10  ;;  %v281_v20 = vld [vmem:[%s278_s27] sm:$0xff]  ;;  %p1143_p12 = scmp.ne.s32.totalorder %s1141_s13, %s1142_s15  ;;  %s1146_s18 = scalar_lea.hbm %s1593_s6, 32 }
  0x1a   : > { %v694_v13 = vand.u32 4294901760, %v693_v9  ;;  %1045 = vmatpush.msra.mxu2 %v657_v4  ;;  %658 = vmatpush.msra.mxu0 %v657_v4  ;;  %v712_v25 = vand.u32 4294901760, %v711_v24  ;;  %v309_v31 = vcvt.s32.f32 %v303_v30  ;;  %v314_v37 = vmul.f32 %v1118_v32, %v308_v33  ;;  %p1148_p2 = scmp.lt.s32.totalorder %s1146_s18, %s1142_s15 }
  0x1b   : > { %289 = vperm.xlu0 %1117, %v282_v12   ;;  %v701_v15 = vsub.f32 %v699_v8, %v700_v11  ;;  %v707_v17 = vsub.f32 %v705_v10, %v706_v14  ;;  %v1210_v12 = vmov 2475754826   ;;  %p1144_p13 = pnand %p1143_p12, %p1291_p4 }
  0x1c   : > { %v695_v16 = vsub.f32 %v693_v9, %v694_v13  ;;  %1046 = vmatpush.msra.mxu2 %v659_v7  ;;  %660 = vmatpush.msra.mxu0 %v659_v7  ;;  %v713_v26 = vsub.f32 %v711_v24, %v712_v25  ;;  %v315_v34 = vmul.f32 %v1118_v32, %v309_v31  ;;  %p1149_p3 = por %p1148_p2, %p1147_p1 }
  0x1d   : > { %v702_v19 = vand.u32 4294901760, %v701_v15  ;;  %v708_v21 = vand.u32 4294901760, %v707_v17  ;;  %v1332_v40 = vadd.f32 %v1119_v35, %v314_v37  ;;  %v1211_v15 = vmov 2131351028   ;;  %p1145_p0 = pneg %p1144_p13 }
  0x1e   : > { %v696_v18 = vand.u32 4294901760, %v695_v16  ;;  %1047 = vmatpush.msra.mxu2 %v661_v23  ;;  %662 = vmatpush.msra.mxu0 %v661_v23  ;;  %v714_v27 = vand.u32 4294901760, %v713_v26  ;;  %v1330_v38 = vadd.f32 %v1119_v35, %v315_v34  ;;  %v1213_v26 = vmov 1326507024  }
  0x1f   : > { %v325_v46 = vand.u32 2139095040, %v1332_v40  ;;  %v322_v34 = vand.u32 2147483647, %v1332_v40  ;;  %p1150_p5 = pnand %p1149_p3, %p1145_p0 }
  0x20   : > { %1048 = vmatpush.msra.mxu3 %v696_v18  ;;  %697 = vmatpush.msra.mxu1 %v696_v18  ;;  %v480_v41 = vand.u32 2139095040, %v1330_v38 }
  0x21   : > { %739 = vmatpush.msrb.mxu2 %v693_v9  ;;  %808 = vmatpush.msrb.mxu0 %v694_v13  ;;  %v326_v51 = vshrl.u32 %v325_v46, 23 }
  0x22   : > { %1049 = vmatpush.msra.mxu3 %v702_v19  ;;  %703 = vmatpush.msra.mxu1 %v702_v19  ;;  %v481_v47 = vshrl.u32 %v480_v41, 23 }
  0x23   : > { %286 = vperm.xlu0 %1117, %v281_v20   ;;  %742 = vmatpush.msrb.mxu2 %v699_v8  ;;  %v1025_v57 = vadd.s32 4294967169, %v326_v51 }
  0x24   : > { %1050 = vmatpush.msra.mxu3 %v708_v21  ;;  %709 = vmatpush.msra.mxu1 %v708_v21  ;;  %v1028_v52 = vadd.s32 4294967169, %v481_v47  ;;  %v1212_v21 = vmov 920167782  }
  0x25   : > { %812 = vmatpush.msrb.mxu0 %v700_v11  ;;  %745 = vmatpush.msrb.mxu2 %v705_v10  ;;  %v332_v61 = vadd.s32 1, %v1025_v57  ;;  %v1209_v10 = vmov 683565275  }
  0x26   : > { %1051 = vmatpush.msra.mxu3 %v714_v27  ;;  %715 = vmatpush.msra.mxu1 %v714_v27  ;;  %v487_v58 = vadd.s32 1, %v1028_v52 }
  0x27   : > { %816 = vmatpush.msrb.mxu0 %v706_v14  ;;  %748 = vmatpush.msrb.mxu2 %v711_v24  ;;  %vm333_vm5 = vcmp.gt.s32.totalorder %v332_v61, 0 }
  0x28   : > { %773 = vmatpush.msrb.mxu3 %v655_v6  ;;  %843 = vmatpush.msrb.mxu1 %v655_v6  ;;  %vm488_vm4 = vcmp.gt.s32.totalorder %v487_v58, 0  ;;  %v334_v1 = vsel %vm333_vm5, %v332_v61, 0  ;;  %v477_v6 = vand.u32 2147483647, %v1330_v38 }
  0x29   : > { %820 = vmatpush.msrb.mxu0 %v712_v25  ;;  %v489_v63 = vsel %vm488_vm4, %v487_v58, 0  ;;  %v1347_v3 = vand.u32 31, %v334_v1 }
  0x2a   : > { %775 = vmatpush.msrb.mxu3 %v657_v4  ;;  %845 = vmatpush.msrb.mxu1 %v657_v4  ;;  %v491_v0 = vand.u32 31, %v489_v63  ;;  %v1349_v4 = vshrl.u32 %v489_v63, 5  ;;  %v484_v9 = vand.u32 8388607, %v477_v6 }
  0x2b   : > { %v1394_v35 = vsub.s32 32, %v1347_v3  ;;  %v339_v41 = vshll.u32 %v1209_v10, %v1347_v3 }
  0x2c   : > { %777 = vmatpush.msrb.mxu3 %v659_v7  ;;  %847 = vmatpush.msrb.mxu1 %v659_v7  ;;  %v1352_v5 = vsub.s32 32, %v491_v0  ;;  %v1208_v7 = vmov 2102212464   ;;  %v494_v11 = vshll.u32 %v1209_v10, %v491_v0  ;;  %v497_v14 = vshll.u32 %v1210_v12, %v491_v0 }
  0x2d   : > { %v503_v8 = vshll.u32 %v1208_v7, %v491_v0  ;;  %v500_v17 = vshll.u32 %v1211_v15, %v491_v0  ;;  %v485_v19 = vor.u32 8388608, %v484_v9  ;;  %vm509_vm6 = vcmp.lt.s32.totalorder %v1349_v4, 1 }
  0x2e   : > { %779 = vmatpush.msrb.mxu3 %v661_v23  ;;  %849 = vmatpush.msrb.mxu1 %v661_v23  ;;  %v495_v13 = vshrl.u32 %v1210_v12, %v1352_v5  ;;  %v498_v16 = vshrl.u32 %v1211_v15, %v1352_v5  ;;  %v501_v18 = vshrl.u32 %v1208_v7, %v1352_v5  ;;  %vm511_vm7 = vcmp.lt.s32.totalorder %v1349_v4, 3 }
  0x2f   : > { %v504_v22 = vshrl.u32 %v1212_v21, %v1352_v5  ;;  %v506_v23 = vshll.u32 %v1212_v21, %v491_v0  ;;  %v507_v27 = vshrl.u32 %v1213_v26, %v1352_v5  ;;  %vm512_vm8 = vcmp.lt.s32.totalorder %v1349_v4, 4 }
  0x30   : > { %v1363_v20 = vor.u32 %v495_v13, %v494_v11  ;;  %v1368_v24 = vor.u32 %v498_v16, %v497_v14  ;;  %v1370_v25 = vor.u32 %v501_v18, %v500_v17  ;;  %vm510_vm9 = vcmp.lt.s32.totalorder %v1349_v4, 2 }
  0x31   : > { %v505_v28 = vor.u32 %v504_v22, %v503_v8  ;;  %v508_v29 = vor.u32 %v507_v27, %v506_v23  ;;  %v1384_v31 = vshll.u32 %v485_v19, 8  ;;  %v343_v61 = vshrl.u32 %v1211_v15, %v1394_v35 }
  0x32   : > { %v517_v30 = vsel %vm509_vm6, %v1363_v20, %v1368_v24  ;;  %v521_v33 = vsel %vm509_vm6, %v1368_v24, %v1370_v25  ;;  %v346_v14 = vshrl.u32 %v1208_v7, %v1394_v35  ;;  %v348_v16 = vshll.u32 %v1208_v7, %v1347_v3 }
  0x33   : > { %v518_v32 = vsel %vm512_vm8, %v505_v28, 920167782  ;;  %v522_v37 = vsel %vm512_vm8, %v508_v29, 1326507024  ;;  %v349_v19 = vshrl.u32 %v1212_v21, %v1394_v35  ;;  %v493_v7 = vshrl.u32 %v1209_v10, %v1352_v5 }
  0x8d   : > { %v290_v39 = vpop.permute.xlu0 %289 }
  0x8e   : > { %vm292_vm2 = vcmp.eq.s32.totalorder %v284_v36, %v290_v39  ;;  %v526_v39 = vand.u32 65535, %v1384_v31 }
  0x8f   : > { %v1335_v43 = vsel %vm292_vm2, 1.0, %v1207_v42 }
  0x90   : > { %v637_v44 = vsel %vm632_vm1, %v1335_v43, 0  ;;  %1032 = vmatmul.msk.f32.vlgmr.msra.gmra.mxu3 %vm632_vm1, %v1335_v43 }
  0x91   : > { %v672_v45 = vsub.f32 %v637_v44, %v637_v44  ;;  %v527_v44 = vshrl.u32 %v1384_v31, 16 }
  0x93   : > { %v673_v48 = vand.u32 4294901760, %v672_v45 }
  0x95   : > { %v287_v49 = vpop.permute.xlu0 %286  ;;  %v674_v50 = vsub.f32 %v672_v45, %v673_v48 }
  0x96   : > { %vm291_vm3 = vcmp.eq.s32.totalorder %v284_v36, %v287_v49  ;;  %v519_v36 = vsel %vm511_vm7, %v1370_v25, %v518_v32  ;;  %v340_v49 = vshrl.u32 %v1210_v12, %v1394_v35 }
  0x97   : > { %v1023_v53 = vsel %vm291_vm3, 1.0, %v1207_v42  ;;  %v675_v54 = vand.u32 4294901760, %v674_v50  ;;  %v520_v42 = vsel %vm510_vm9, %v517_v30, %v519_v36  ;;  %v1416_v50 = vshrl.u32 %v334_v1, 5 }
  0x98   : > { %v634_v55 = vsel %vm632_vm1, %v1023_v53, 0  ;;  %1031 = vmatmul.msk.f32.vlgmr.msra.gmra.mxu1 %vm632_vm1, %v1023_v53  ;;  %v550_v47 = vand.u32 65535, %v520_v42  ;;  %v1421_v8 = vor.u32 %v340_v49, %v339_v41  ;;  %v514_v36 = vsel %vm512_vm8, %v1370_v25, 2102212464 }
  0x99   : > { %v664_v56 = vsub.f32 %v634_v55, %v634_v55  ;;  %676 = vmatmul.f32.vlgmr.msra.gmra.mxu2 %v675_v54  ;;  %v351_v25 = vshll.u32 %v1212_v21, %v1347_v3  ;;  %vm354_vm14 = vcmp.lt.s32.totalorder %v1416_v50, 1  ;;  %vm356_vm15 = vcmp.lt.s32.totalorder %v1416_v50, 3 }
  0x9a   : > { %v552_v54 = vmul.u32 %v550_v47, %v526_v39  ;;  %vm357_vm0 = vcmp.lt.s32.totalorder %v1416_v50, 4 }
  0x9b   : > { %v665_v59 = vand.u32 4294901760, %v664_v56 }
  0x9d   : > { %783 = vmatmul.f32.vlgmr.msrb.gmra.mxu3 %v665_v59  ;;  %v666_v60 = vsub.f32 %v664_v56, %v665_v59 }
  0x9f   : > { %v667_v62 = vand.u32 4294901760, %v666_v60 }
  0xa0   : > { %1035 = vmatmul.msk.f32.vlgmr.msrb.gmra.mxu1 %vm632_vm1, %v1023_v53 }
  0xa1   : > { %668 = vmatmul.f32.vlgmr.msra.gmra.mxu0 %v667_v62  ;;  %751 = vmatmul.f32.vlgmr.msrb.gmra.mxu2 %v664_v56  ;;  %v554_v56 = vmul.u32 %v550_v47, %v527_v44 }
  0xa3   : > { %v558_v0 = vshll.u32 %v554_v56, 16  ;;  %v559_v32 = vshrl.u32 %v554_v56, 16 }
  0xa5   : > { %789 = vmatmul.f32.gmra.mxu3 %v673_v48  ;;  %v551_v48 = vshrl.u32 %v520_v42, 16  ;;  %v513_v42 = vsel %vm509_vm6, %v493_v7, %v1363_v20  ;;  %v352_v20 = vshrl.u32 %v1213_v26, %v1394_v35 }
  0xa7   : > { %v553_v55 = vmul.u32 %v551_v48, %v526_v39  ;;  %v555_v62 = vmul.u32 %v551_v48, %v527_v44 }
  0xa8   : > { %1036 = vmatmul.msk.f32.gmra.mxu1 %vm632_vm1, %v1335_v43 }
  0xa9   : > { %756 = vmatmul.f32.gmra.mxu2 %v672_v45  ;;  %1033 = vmatmul.msk.f32.vlgmr.msrb.gmra.mxu0 %vm632_vm1, %v1023_v53  ;;  %v1411_v45 = vand.u32 8388607, %v322_v34  ;;  %v342_v53 = vshll.u32 %v1210_v12, %v1347_v3  ;;  %v556_v63 = vshll.u32 %v553_v55, 16  ;;  %v345_v12 = vshll.u32 %v1211_v15, %v1347_v3 }
  0xaa   : > { %v557_v23 = vshrl.u32 %v553_v55, 16 }
  0xab   : > { %v330_v57 = vor.u32 8388608, %v1411_v45  ;;  %vm560_vm10 = vc.u32 %v552_v54, %v556_v63  ;;  %v562_v13 = vadd.s32 %v556_v63, %v552_v54  ;;  %v344_v41 = vor.u32 %v343_v61, %v342_v53 }
  0xac   : > { %v561_v18 = vsel %vm560_vm10, 1, %v1206_v2  ;;  %v353_v53 = vor.u32 %v352_v20, %v351_v25 }
  0xad   : > { %v563_v27 = vadd.s32 %v561_v18, %v555_v62  ;;  %vm564_vm12 = vc.u32 %v562_v13, %v558_v0  ;;  %v1447_v48 = vadd.s32 %v562_v13, %v558_v0  ;;  %v362_v3 = vsel %vm354_vm14, %v1421_v8, %v344_v41 }
  0xae   : > { %v565_v29 = vsel %vm564_vm12, 1, %v1206_v2  ;;  %vm479_vm12 = vcmp.lt.s32.totalorder %v1330_v38, 0 }
  0xb1   : > { %1034 = vmatmul.msk.f32.gmra.mxu0 %vm632_vm1, %v1335_v43  ;;  %v523_v43 = vsel %vm511_vm7, %v505_v28, %v522_v37  ;;  %vm355_vm1 = vcmp.lt.s32.totalorder %v1416_v50, 2 }
  0xb2   : > { %v524_v46 = vsel %vm510_vm9, %v521_v33, %v523_v43  ;;  %v567_v33 = vadd.s32 %v565_v29, %v563_v27  ;;  %v515_v43 = vsel %vm511_vm7, %v1368_v24, %v514_v36 }
  0xb3   : > { %v528_v51 = vand.u32 65535, %v524_v46  ;;  %v529_v52 = vshrl.u32 %v524_v46, 16  ;;  %v516_v46 = vsel %vm510_vm9, %v513_v42, %v515_v43 }
  0xb4   : > { %v568_v5 = vadd.s32 %v567_v33, %v557_v23  ;;  %v570_v24 = vmul.u32 %v1384_v31, %v516_v46 }
  0xb5   : > { %v530_v58 = vmul.u32 %v528_v51, %v526_v39  ;;  %v531_v59 = vmul.u32 %v529_v52, %v526_v39  ;;  %v532_v60 = vmul.u32 %v528_v51, %v527_v44  ;;  %v533_v1 = vmul.u32 %v529_v52, %v527_v44 }
  0xb6   : > { %v350_v44 = vor.u32 %v349_v19, %v348_v16  ;;  %v569_v49 = vadd.s32 %v568_v5, %v559_v32  ;;  %v347_v51 = vor.u32 %v346_v14, %v345_v12 }
  0xb7   : > { %v534_v9 = vshll.u32 %v531_v59, 16  ;;  %v536_v11 = vshll.u32 %v532_v60, 16  ;;  %v535_v15 = vshrl.u32 %v531_v59, 16  ;;  %v537_v37 = vshrl.u32 %v532_v60, 16 }
  0xb8   : > { %v573_v4 = vadd.s32 1, %v569_v49  ;;  %v363_v21 = vsel %vm357_vm0, %v350_v44, 920167782  ;;  %v366_v54 = vsel %vm354_vm14, %v344_v41, %v347_v51  ;;  %v1477_v59 = vshll.u32 %v330_v57, 8 }
  0xb9   : > { %vm538_vm11 = vc.u32 %v530_v58, %v534_v9  ;;  %v540_v17 = vadd.s32 %v534_v9, %v530_v58  ;;  %v364_v31 = vsel %vm356_vm15, %v347_v51, %v363_v21  ;;  %v367_v58 = vsel %vm357_vm0, %v353_v53, 1326507024 }
  0xba   : > { %v539_v22 = vsel %vm538_vm11, 1, %v1206_v2  ;;  %v365_v56 = vsel %vm355_vm1, %v362_v3, %v364_v31  ;;  %v338_v60 = vshrl.u32 %v1209_v10, %v1394_v35  ;;  %v368_v61 = vsel %vm356_vm15, %v350_v44, %v367_v58 }
  0xbb   : > { %v541_v28 = vadd.s32 %v539_v22, %v533_v1  ;;  %vm542_vm13 = vc.u32 %v540_v17, %v536_v11  ;;  %v395_v62 = vand.u32 65535, %v365_v56  ;;  %v396_v63 = vshrl.u32 %v365_v56, 16 }
  0xbc   : > { %v543_v30 = vsel %vm542_vm13, 1, %v1206_v2  ;;  %v369_v1 = vsel %vm355_vm1, %v366_v54, %v368_v61  ;;  %v371_v9 = vand.u32 65535, %v1477_v59  ;;  %v372_v11 = vshrl.u32 %v1477_v59, 16 }
  0xbd   : > { %v545_v39 = vadd.s32 %v543_v30, %v541_v28  ;;  %v359_v45 = vsel %vm357_vm0, %v347_v51, 2102212464  ;;  %v373_v57 = vand.u32 65535, %v369_v1  ;;  %v374_v12 = vshrl.u32 %v369_v1, 16 }
  0xbe   : > { %v397_v10 = vmul.u32 %v395_v62, %v371_v9  ;;  %v398_v35 = vmul.u32 %v396_v63, %v371_v9  ;;  %v399_v14 = vmul.u32 %v395_v62, %v372_v11  ;;  %v358_v22 = vsel %vm354_vm14, %v338_v60, %v1421_v8 }
  0xbf   : > { %v546_v47 = vadd.s32 %v545_v39, %v535_v15  ;;  %v375_v16 = vmul.u32 %v373_v57, %v371_v9  ;;  %v376_v17 = vmul.u32 %v374_v12, %v371_v9  ;;  %v377_v18 = vmul.u32 %v373_v57, %v372_v11 }
  0xc0   : > { %v400_v23 = vmul.u32 %v396_v63, %v372_v11  ;;  %v401_v27 = vshll.u32 %v398_v35, 16  ;;  %v360_v15 = vsel %vm356_vm15, %v344_v41, %v359_v45  ;;  %v378_v28 = vmul.u32 %v374_v12, %v372_v11 }
  0xc1   : > { %v1454_v52 = vadd.s32 %v546_v47, %v537_v37  ;;  %v379_v29 = vshll.u32 %v376_v17, 16  ;;  %v381_v7 = vshll.u32 %v377_v18, 16  ;;  %v402_v32 = vshrl.u32 %v398_v35, 16 }
  0xc2   : > { %v403_v33 = vshll.u32 %v399_v14, 16  ;;  %vm405_vm3 = vc.u32 %v397_v10, %v401_v27  ;;  %v407_v39 = vadd.s32 %v401_v27, %v397_v10  ;;  %v380_v5 = vshrl.u32 %v376_v17, 16 }
  0xc3   : > { %vm572_vm2 = vc.u32 %v1454_v52, %v1447_v48  ;;  %vm383_vm4 = vc.u32 %v375_v16, %v379_v29  ;;  %v385_v36 = vadd.s32 %v379_v29, %v375_v16  ;;  %v406_v37 = vsel %vm405_vm3, 1, %v1206_v2 }
  0xc4   : > { %v574_v26 = vsel %vm572_vm2, %v573_v4, %v569_v49  ;;  %v384_v8 = vsel %vm383_vm4, 1, %v1206_v2  ;;  %v408_v43 = vadd.s32 %v406_v37, %v400_v23  ;;  %vm409_vm7 = vc.u32 %v407_v39, %v403_v33 }
  0xc5   : > { %v575_v55 = vadd.s32 %v574_v26, %v570_v24  ;;  %v386_v44 = vadd.s32 %v384_v8, %v378_v28  ;;  %vm387_vm6 = vc.u32 %v385_v36, %v381_v7  ;;  %v382_v46 = vshrl.u32 %v377_v18, 16 }
  0xc6   : > { %v388_v47 = vsel %vm387_vm6, 1, %v1206_v2  ;;  %v410_v25 = vsel %vm409_vm7, 1, %v1206_v2  ;;  %v404_v20 = vshrl.u32 %v399_v14, 16  ;;  %v361_v4 = vsel %vm355_vm1, %v358_v22, %v360_v15 }
  0xc7   : > { %v576_v0 = vadd.s32 536870912, %v575_v55  ;;  %v390_v51 = vadd.s32 %v388_v47, %v386_v44  ;;  %v412_v24 = vadd.s32 %v410_v25, %v408_v43  ;;  %v411_v21 = vadd.s32 %v407_v39, %v403_v33 }
  0xc8   : > { %v415_v56 = vmul.u32 %v1477_v59, %v361_v4  ;;  %v571_v60 = vadd.s32 %v1447_v48, %v1454_v52  ;;  %vm1509_vm13 = vcmp.le.f32.partialorder %v477_v6, 0.7853982  ;;  %vm324_vm14 = vcmp.lt.s32.totalorder %v1332_v40, 0 }
  0xc9   : > { %v1489_v13 = vshrl.u32 %v576_v0, 30  ;;  %v391_v3 = vadd.s32 %v390_v51, %v380_v5  ;;  %v413_v26 = vadd.s32 %v412_v24, %v402_v32  ;;  %vm1521_vm15 = vcmp.le.f32.partialorder %v322_v34, 0.7853982 }
  0xca   : > { %vm465_vm3 = vweird.f32 %v1332_v40  ;;  %vm620_vm7 = vweird.f32 %v1330_v38 }
  0xcb   : > { %v578_v19 = vshll.u32 %v1489_v13, 30  ;;  %v392_v31 = vadd.s32 %v391_v3, %v382_v46  ;;  %v414_v54 = vadd.s32 %v413_v26, %v404_v20 }
  0xcd   : > { %v579_v30 = vsub.s32 %v575_v55, %v578_v19  ;;  %vm417_vm9 = vc.u32 %v392_v31, %v411_v21  ;;  %v418_v2 = vadd.s32 1, %v414_v54  ;;  %v416_v19 = vadd.s32 %v411_v21, %v392_v31 }
  0xcf   : > { %vm580_vm5 = vcmp.lt.s32.totalorder %v579_v30, 0  ;;  %v581_v42 = vsub.s32 0, %v579_v30  ;;  %v419_v50 = vsel %vm417_vm9, %v418_v2, %v414_v54 }
  0xd0   : > { %v420_v63 = vadd.s32 %v419_v50, %v415_v56  ;;  %v601_v56 = vsub.s32 4, %v1489_v13 }
  0xd1   : > { %v582_v41 = vsel %vm580_vm5, %v581_v42, %v579_v30 }
  0xd2   : > { %v583_v49 = vclz %v582_v41  ;;  %v421_v11 = vadd.s32 536870912, %v420_v63 }
  0xd4   : > { %v1029_v53 = vadd.s32 4294967294, %v583_v49  ;;  %v422_v45 = vshrl.u32 %v421_v11, 30 }
  0xd6   : > { %vm1030_vm8 = vcmp.lt.s32.totalorder %v1029_v53, 0  ;;  %v423_v10 = vshll.u32 %v422_v45, 30  ;;  %v446_v25 = vsub.s32 4, %v422_v45 }
  0xd7   : > { %v586_v55 = vsel %vm1030_vm8, 0, %v1029_v53  ;;  %vm859_vm8 = vcmask 261120  }
  0xd8   : > { %v591_v58 = vsub.s32 4294967266, %v586_v55  ;;  %v587_v61 = vsub.s32 32, %v586_v55  ;;  %v588_v0 = vshll.u32 %v579_v30, %v586_v55  ;;  %v424_v35 = vsub.s32 %v420_v63, %v423_v10 }
  0xd9   : > { %v447_v3 = vsel %vm324_vm14, %v446_v25, %v422_v45 }
  0xda   : > { %v592_v62 = vadd.s32 127, %v591_v58  ;;  %v589_v1 = vshrl.u32 %v571_v60, %v587_v61  ;;  %vm425_vm10 = vcmp.lt.s32.totalorder %v424_v35, 0  ;;  %v426_v16 = vsub.s32 0, %v424_v35 }
  0xdb   : > { %v449_v31 = vsel %vm1521_vm15, 0, %v447_v3 }
  0xdc   : > { %v593_v9 = vshll.u32 %v592_v62, 23  ;;  %v590_v57 = vor.u32 %v589_v1, %v588_v0  ;;  %v427_v17 = vsel %vm425_vm10, %v426_v16, %v424_v35  ;;  %v466_v62 = vadd.s32 3, %v449_v31 }
  0xdd   : > { %v428_v18 = vclz %v427_v17  ;;  %v602_v0 = vsel %vm479_vm12, %v601_v56, %v1489_v13 }
  0xde   : > { %v594_v12 = vor.u32 4788187, %v593_v9  ;;  %v597_v14 = vcvt.s32.f32 %v590_v57  ;;  %v467_v57 = vand.u32 3, %v466_v62 }
  0xdf   : > { %v1026_v52 = vadd.s32 4294967294, %v428_v18 }
  0xe0   : > { %v595_v59 = vand.u32 2147483647, %v594_v12  ;;  %v604_v12 = vsel %vm1509_vm13, 0, %v602_v0  ;;  %vm469_vm0 = vcmp.eq.s32.totalorder %v467_v57, 0  ;;  %vm472_vm1 = vcmp.eq.s32.totalorder %v467_v57, 2 }
  0xe1   : > { %vm1027_vm11 = vcmp.lt.s32.totalorder %v1026_v52, 0  ;;  %v621_v17 = vadd.s32 3, %v604_v12  ;;  %vm468_vm2 = vcmp.lt.s32.totalorder %v467_v57, 2 }
  0xe2   : > { %v598_v48 = vmul.f32 %v597_v14, %v595_v59  ;;  %v431_v23 = vsel %vm1027_vm11, 0, %v1026_v52 }
  0xe3   : > { %v432_v27 = vsub.s32 32, %v431_v23  ;;  %v433_v15 = vshll.u32 %v424_v35, %v431_v23  ;;  %v436_v28 = vsub.s32 4294967266, %v431_v23 }
  0xe4   : > { %v599_v22 = vxor.u32 2147483648, %v598_v48 }
  0xe5   : > { %v434_v29 = vshrl.u32 %v416_v19, %v432_v27  ;;  %v437_v32 = vadd.s32 127, %v436_v28  ;;  %v622_v19 = vand.u32 3, %v621_v17  ;;  %v1120_v17 = vld [vmem:[%s1591_s4] ss:$0 sm:$0xff] }
  0xe6   : > { %v600_v30 = vsel %vm479_vm12, %v599_v22, %v598_v48 }
  0xe7   : > { %v435_v33 = vor.u32 %v434_v29, %v433_v15  ;;  %v438_v36 = vshll.u32 %v437_v32, 23  ;;  %v603_v37 = vsel %vm1509_vm13, %v1330_v38, %v600_v30  ;;  %vm624_vm4 = vcmp.eq.s32.totalorder %v622_v19, 0 }
  0xe8   : > { %v605_v8 = vmul.f32 %v603_v37, %v603_v37  ;;  %vm627_vm5 = vcmp.eq.s32.totalorder %v622_v19, 2  ;;  %vm623_vm6 = vcmp.lt.s32.totalorder %v622_v19, 2 }
  0xe9   : > { %v439_v39 = vor.u32 4788187, %v438_v36  ;;  %v442_v42 = vcvt.s32.f32 %v435_v33 }
  0xea   : > { %v613_v6 = vmul.f32 -0.00019511016, %v605_v8  ;;  %v606_v47 = vmul.f32 -0.001358992, %v605_v8 }
  0xeb   : > { %v440_v43 = vand.u32 2147483647, %v439_v39 }
  0xec   : > { %v614_v51 = vadd.f32 0.008332121, %v613_v6  ;;  %v607_v53 = vadd.f32 0.041655596, %v606_v47 }
  0xed   : > { %v443_v5 = vmul.f32 %v442_v42, %v440_v43 }
  0xee   : > { %v615_v21 = vmul.f32 %v614_v51, %v605_v8  ;;  %v608_v58 = vmul.f32 %v607_v53, %v605_v8 }
  0xef   : > { %v444_v41 = vxor.u32 2147483648, %v443_v5 }
  0xf0   : > { %v616_v2 = vadd.f32 -0.16666654, %v615_v21  ;;  %v609_v1 = vadd.f32 -0.4999988, %v608_v58 }
  0xf1   : > { %v445_v46 = vsel %vm324_vm14, %v444_v41, %v443_v5 }
  0xf2   : > { %v448_v49 = vsel %vm1521_vm15, %v1332_v40, %v445_v46  ;;  %v617_v9 = vmul.f32 %v616_v2, %v605_v8  ;;  %v610_v35 = vmul.f32 %v609_v1, %v605_v8 }
  0xf3   : > { %v450_v20 = vmul.f32 %v448_v49, %v448_v49 }
  0xf4   : > { %v618_v59 = vadd.f32 1.0, %v617_v9  ;;  %v611_v18 = vadd.f32 1.0, %v610_v35 }
  0xf5   : > { %v451_v24 = vmul.f32 -0.001358992, %v450_v20  ;;  %v458_v4 = vmul.f32 -0.00019511016, %v450_v20 }
  0xf6   : > { %v619_v48 = vmul.f32 %v618_v59, %v603_v37  ;;  %v628_v27 = vxor.u32 2147483648, %v611_v18 }
  0xf7   : > { %v452_v26 = vadd.f32 0.041655596, %v451_v24  ;;  %v459_v34 = vadd.f32 0.008332121, %v458_v4 }
  0xf8   : > { %v625_v23 = vxor.u32 2147483648, %v619_v48  ;;  %v629_v32 = vsel %vm627_vm5, %v628_v27, %v619_v48 }
  0xf9   : > { %v453_v54 = vmul.f32 %v452_v26, %v450_v20  ;;  %v460_v55 = vmul.f32 %v459_v34, %v450_v20 }
  0xfa   : > { %v626_v30 = vsel %vm624_vm4, %v611_v18, %v625_v23 }
  0xfb   : > { %v454_v60 = vadd.f32 -0.4999988, %v453_v54  ;;  %v461_v61 = vadd.f32 -0.16666654, %v460_v55  ;;  %v630_v37 = vsel %vm623_vm6, %v626_v30, %v629_v32 }
  0xfc   : > { %v631_v42 = vsel %vm620_vm7, nan, %v630_v37 }
  0xfd   : > { %v455_v50 = vmul.f32 %v454_v60, %v450_v20  ;;  %v462_v63 = vmul.f32 %v461_v61, %v450_v20 }
  0xff   : > { %v456_v11 = vadd.f32 1.0, %v455_v50  ;;  %v463_v45 = vadd.f32 1.0, %v462_v63 }
 0x101   : > { %v464_v10 = vmul.f32 %v463_v45, %v448_v49  ;;  %v473_v16 = vxor.u32 2147483648, %v456_v11 }
 0x103   : > { %v470_v14 = vxor.u32 2147483648, %v464_v10  ;;  %v474_v52 = vsel %vm472_vm1, %v473_v16, %v464_v10 }
 0x105   : > { %v471_v13 = vsel %vm469_vm0, %v456_v11, %v470_v14 }
 0x106   : > { %v475_v22 = vsel %vm468_vm2, %v471_v13, %v474_v52  ;;  %v1121_v13 = vld [vmem:[%s1592_s5] ss:$0 sm:$0xff] }
 0x107   : > { %v476_v29 = vsel %vm465_vm3, nan, %v475_v22 }
 0x113   : > { %v722_v15 = vpop.f32.mrf.mxu3 }
 0x115   : > { %v718_v7 = vpop.f32.mrf.mxu1 }
 0x11c   : > { %v677_v28 = vpop.f32.mrf.mxu2 }
 0x11d   : > { %v678_v6 = vadd.f32 %v677_v28, %v631_v42  ;;  %v852_v41 = vpop.f32.mrf.mxu1 }
 0x11e   : > { %v669_v33 = vpop.f32.mrf.mxu0 }
 0x11f   : > { %v670_v36 = vadd.f32 %v669_v33, %v476_v29  ;;  %v723_v47 = vadd.f32 %v722_v15, %v678_v6 }
 0x120   : > { %v784_v40 = vpop.f32.mrf.mxu3 }
 0x121   : > { %v719_v39 = vadd.f32 %v718_v7, %v670_v36 }
 0x124   : > { %v752_v8 = vpop.f32.mrf.mxu2 }
 0x125   : > { %v753_v43 = vadd.f32 %v752_v8, %v719_v39  ;;  %v856_v3 = vpop.f32.mrf.mxu1 }
 0x126   : > { %v823_v5 = vpop.f32.mrf.mxu0 }
 0x127   : > { %v785_v44 = vadd.f32 %v784_v40, %v753_v43 }
 0x128   : > { %v790_v24 = vpop.f32.mrf.mxu3 }
 0x129   : > { %v824_v46 = vadd.f32 %v823_v5, %v785_v44 }
 0x12b   : > { %v853_v25 = vadd.f32 %v852_v41, %v824_v46 }
 0x12c   : > { %v757_v49 = vpop.f32.mrf.mxu2 }
 0x12d   : > { %v758_v51 = vadd.f32 %v757_v49, %v723_v47  ;;  %v860_v20 = vsel %vm859_vm8, %v853_v25, 0.0 }
 0x12e   : > { %861 = vadd.xlane.f32.xlu1 %v860_v20  ;;  %v827_v4 = vpop.f32.mrf.mxu0 }
 0x12f   : > { %v791_v38 = vadd.f32 %v790_v24, %v758_v51 }
 0x131   : > { %v828_v53 = vadd.f32 %v827_v4, %v791_v38 }
 0x133   : > { %v857_v21 = vadd.f32 %v856_v3, %v828_v53 }
 0x135   : > { %v863_v26 = vsel %vm859_vm8, %v857_v21, 0.0 }
 0x136   : > { %864 = vadd.xlane.f32.xlu1 %v863_v26 }
 0x1a1   : > { %v862_v34 = vpop.xlane.xlu1 %861 }
 0x1a2   : > { %v866_v31 = vmul.f32 0.03125, %v862_v34 }
 0x1a4   : > { %v868_v54 = vsub.f32 %v853_v25, %v866_v31 }
 0x1a6   : > { %v870_v55 = vmul.f32 %v868_v54, %v868_v54 }
 0x1a8   : > { %v872_v56 = vsel %vm859_vm8, %v870_v55, 0.0 }
 0x1a9   : > { %873 = vadd.xlane.f32.xlu2 %v872_v56  ;;  %v865_v58 = vpop.xlane.xlu1 %864 }
 0x1aa   : > { %v867_v2 = vmul.f32 0.03125, %v865_v58 }
 0x1ac   : > { %v869_v60 = vsub.f32 %v857_v21, %v867_v2 }
 0x1ae   : > { %v871_v61 = vmul.f32 %v869_v60, %v869_v60 }
 0x1b0   : > { %v875_v62 = vsel %vm859_vm8, %v871_v61, 0.0 }
 0x1b1   : > { %876 = vadd.xlane.f32.xlu2 %v875_v62 }
 0x21c   : > { %v874_v50 = vpop.xlane.xlu2 %873 }
 0x21d   : > { %v878_v63 = vmul.f32 0.03125, %v874_v50 }
 0x21f   : > { %v880_v0 = vadd.f32 1e-12, %v878_v63 }
 0x221   : > { %1122 = vrsqrt.f32 %v880_v0  ;;  %vm888_vm10 = vweird.f32 %v880_v0 }
 0x224   : > { %v877_v1 = vpop.xlane.xlu2 %876 }
 0x225   : > { %v879_v9 = vmul.f32 0.03125, %v877_v1 }
 0x227   : > { %v1123_v11 = vpop.eup %1122  ;;  %v881_v45 = vadd.f32 1e-12, %v879_v9 }
 0x228   : > { %v883_v57 = vmul.f32 %v1123_v11, %v880_v0  ;;  %vm889_vm9 = vweird.f32 %v1123_v11 }
 0x229   : > { %1124 = vrsqrt.f32 %v881_v45  ;;  %vm890_vm11 = vmor %vm888_vm10, %vm889_vm9  ;;  %vm898_vm13 = vweird.f32 %v881_v45 }
 0x22a   : > { %v884_v12 = vmul.f32 %v1123_v11, %v883_v57 }
 0x22c   : > { %v885_v10 = vmul.f32 0.5, %v884_v12 }
 0x22e   : > { %v886_v35 = vsub.f32 1.5, %v885_v10 }
 0x22f   : > { %v1125_v59 = vpop.eup %1124 }
 0x230   : > { %v887_v14 = vmul.f32 %v1123_v11, %v886_v35  ;;  %v893_v16 = vmul.f32 %v1125_v59, %v881_v45  ;;  %vm899_vm12 = vweird.f32 %v1125_v59 }
 0x231   : > { %vm900_vm14 = vmor %vm898_vm13, %vm899_vm12 }
 0x232   : > { %v891_v18 = vsel %vm890_vm11, %v1123_v11, %v887_v14  ;;  %v894_v48 = vmul.f32 %v1125_v59, %v893_v16 }
 0x233   : > { %v902_v52 = vmul.f32 %v891_v18, %v868_v54 }
 0x234   : > { %v895_v19 = vmul.f32 0.5, %v894_v48 }
 0x235   : > { %v908_v22 = vmul.f32 %v1120_v17, %v902_v52 }
 0x236   : > { %v896_v23 = vsub.f32 1.5, %v895_v19 }
 0x237   : > { %v914_v27 = vadd.f32 %v1121_v13, %v908_v22 }
 0x238   : > { %v897_v15 = vmul.f32 %v1125_v59, %v896_v23 }
 0x239   : > { %916 = vst.msk [vmem:[%s269_s8] sm:$0xff] %vm859_vm8, %v914_v27 }
 0x23a   : > { %v901_v28 = vsel %vm900_vm14, %v1125_v59, %v897_v15 }
 0x23b   : > { %v903_v29 = vmul.f32 %v901_v28, %v869_v60 }
 0x23d   : > { %v909_v7 = vmul.f32 %v1120_v17, %v903_v29 }
 0x23f   : > { %v915_v30 = vadd.f32 %v1121_v13, %v909_v7 }
 0x241   : > { %917 = vst.msk [vmem:[%s269_s8 + $0x8] sm:$0xff] %vm859_vm8, %v915_v30 }
 0x242   : > { %1153 = shalt.err (!%p1150_p5)
}
 0x243   : > { %s1214_s14 = smov 128   ;;  %s1215_s27 = smov 8  }
 0x244   : > { %1052 = dma.vmem_to_hbm [thread:$0]  (%p1291_p4), %s934_s11, 256, %s936_s12, %s919_s24, %s1214_s14, %s1214_s14, %s1215_s27  }
 0x245 PF: > { %p1058_p6 = scmp.ge.s32.totalorder %s1204_s26, 2  ;;  %s950_s28 = sand.u32 1, %s1184_s21  }
 0x246   : > { %s951_s30 = scalar_lea.sflag [#allocation3], %s950_s28 }
 0x247   : > { %p1055_p7 = pnand %p1058_p6, %p1298_p8 }
 0x249   : > { %p1056_p9 = pneg %p1055_p7 }
 0x24b   : > { %1179 = dma.done.wait (%p1056_p9), %s951_s30, 256  }
 0x24c   : > { %1181 = vsyncadd (%p1056_p9), %s951_s30, 4294967040  ;;  %s19_s26 = sadd.s32 1, %s1204_s26   ;;  %s1600_s21 = smov %s1188_s22 }
 0x24d   : > { %p16_p10 = scmp.ge.s32.totalorder %s19_s26, 4   ;;  %s1601_s22 = smov %s1192_s23 }
 0x24e   : > { %s1602_s23 = smov %s1304_s10  ;;  %s1603_s24 = smov %s1200_s25 }
 0x24f   : > { %s1604_s25 = smov %s1606_s29  ;;  %18 = sbr.rel (!%p16_p10) target bundleno = 4 (0x4), region = 79 }
 0x254   :  { %957 = vsyncpa [#allocation3], 1 }
 0x255   :  { %959 = vsyncpa [#allocation3 + $0x1], 1 }

</bundles_post_ra>
